<compile_context>
chip_gen: v5e
topology: v5e:2x2
jax: 0.10.0
libtpu: 0.0.40
codegen_flags: <defaults>
</compile_context>

<pallas_src>
import functools

import jax
import jax.numpy as jnp
from jax import lax
from jax.experimental import pallas as pl
from jax.experimental.pallas import tpu as pltpu


def _color_aware_conv_kernel(x_ref, w2_ref, w1_ref, b1_ref, cmask_ref,
                             o_ref, stack_ref, *, W):
    """One block of images per grid step, spatial-on-lanes layout.

    x_ref     : (Bblk, Cin, HW)  f32   flattened NCHW images (H*W on lanes)
    w2_ref    : (Cout, Kpad)     bf16  conv weight (BN scale folded, tap-major cols)
                                       + shift column at col 9*Cin, zero pad cols after
    w1_ref    : (Cout, Cin)      f32   0.2 * color 1x1 conv weight
    b1_ref    : (Cout, 1)        f32   0.2 * color 1x1 conv bias
    cmask_ref : (2, HW)          f32   [not-first-column, not-last-column] masks
    o_ref     : (Bblk, Cout, HW) f32   output (lane-dense stores)
    stack_ref : (Kpad, HW)       f32   VMEM scratch: im2col operand for the MXU matmul
    """
    Bblk, Cin, HW = x_ref.shape
    K = 9 * Cin
    Kpad = stack_ref.shape[0]

    w2 = w2_ref[...]                                   # (Cout, Kpad) bf16
    cmask = cmask_ref[...]                             # (2, HW) f32
    not_left = cmask[0:1, :]                           # valid for ox = -1
    not_right = cmask[1:2, :]                          # valid for ox = +1

    # top / bottom row masks from a flat lane iota (h+oy in range  <=>  p in range)
    p = lax.broadcasted_iota(jnp.int32, (1, HW), 1)
    not_top = (p >= W).astype(jnp.float32)             # valid for oy = -1
    not_bot = (p < HW - W).astype(jnp.float32)         # valid for oy = +1

    # Rows K .. Kpad-1 of the stacked operand are all-ones: row K multiplies the folded
    # BN shift column; the remaining pad rows have zero weight columns (ones, not
    # garbage, so 0 * row can never produce NaN).
    stack_ref[pl.ds(K, Kpad - K), :] = jnp.ones((Kpad - K, HW), jnp.float32)

    for b in range(Bblk):
        xb = x_ref[b]                                  # (Cin, HW) f32

        # im2col via XLU lane rolls + border masks (exactly reproduces zero padding).
        t = 0
        for oy in (-1, 0, 1):
            for ox in (-1, 0, 1):
                s = oy * W + ox                        # flat-index offset of this tap
                # out[p] needs x[p + s]  ->  roll so lane p picks up x[p + s]
                slab = xb if s == 0 else pltpu.roll(xb, (-s) % HW, 1)
                if oy == -1:
                    slab = slab * not_top
                elif oy == 1:
                    slab = slab * not_bot
                if ox == -1:
                    slab = slab * not_left
                elif ox == 1:
                    slab = slab * not_right
                stack_ref[pl.ds(t * Cin, Cin), :] = slab
                t += 1

        # Single MXU pass: (Cout, Kpad) x (Kpad, HW) -> f32 accumulator.
        acc = jnp.dot(w2, stack_ref[...].astype(jnp.bfloat16),
                      preferred_element_type=jnp.float32)        # (Cout, HW)
        y = acc * jax.nn.sigmoid(acc)                             # SiLU (shift folded)

        # Color branch (exact by linearity given H,W % 8 == 0):
        #   0.2*(conv1x1(mean_HW(x)) + b1) == mean_HW(0.2*w1 @ x) + 0.2*b1
        cs = jnp.dot(w1_ref[...], xb, preferred_element_type=jnp.float32)  # (Cout, HW)
        color = jnp.mean(cs, axis=1, keepdims=True) + b1_ref[...]          # (Cout, 1)

        o_ref[b] = (y + color).astype(o_ref.dtype)


def _pick_block_images(n):
    """Amortize per-grid-step overhead but keep >= 2 grid steps for v7x's 2 TCs."""
    for b in (8, 4, 2):
        if n % b == 0 and n // b >= 2:
            return b
    return 1


def color_aware_conv(x_nchw, params, *, block_images=None, out_dtype=None):
    """Pallas implementation of ColorAwareConv.forward (stride=1, eval mode)."""
    w_conv = params["w_conv"]                # (Cout, Cin, 3, 3)  PyTorch OIHW
    gamma, beta = params["gamma"], params["beta"]
    run_mean, run_var = params["running_mean"], params["running_var"]
    w1, b1 = params["w1"], params["b1"]      # (Cout, Cin), (Cout,)

    N, Cin, H, W = x_nchw.shape
    Cout = w_conv.shape[0]
    HW = H * W
    # TODO(synk): adaptive_avg_pool2d with H or W not divisible by 8 needs variable bins.
    assert H % 8 == 0 and W % 8 == 0

    if block_images is None:
        block_images = _pick_block_images(N)
    assert N % block_images == 0
    # Output dtype: keep f32 by default; pass jnp.bfloat16 if downstream tolerates it
    # (halves the dominant HBM write stream for large HW).
    if out_dtype is None:
        out_dtype = jnp.float32

    x_flat = x_nchw.astype(jnp.float32).reshape(N, Cin, HW)   # free reshape, no cast pass

    # ---- fold BatchNorm (eval) into the conv weight + per-channel shift ----
    eps = 1e-5
    scale = gamma / jnp.sqrt(run_var + eps)                        # (Cout,)
    shift = beta - run_mean * scale                                # (Cout,)
    # (Cout,Cin,3,3) -> (Cout, ky, kx, Cin) -> (Cout, 9*Cin), tap-major columns.
    w2 = (w_conv * scale[:, None, None, None]).transpose(0, 2, 3, 1).reshape(Cout, 9 * Cin)
    K = 9 * Cin
    Kpad = ((K + 1 + 7) // 8) * 8
    w2_ext = jnp.concatenate(
        [w2, shift[:, None], jnp.zeros((Cout, Kpad - K - 1), w2.dtype)], axis=1
    ).astype(jnp.bfloat16)                                          # (Cout, Kpad)

    # ---- color 1x1 conv params, 0.2 factor folded in ----
    w1s = (0.2 * w1).astype(jnp.float32)                            # (Cout, Cin)
    b1s = (0.2 * b1).reshape(Cout, 1).astype(jnp.float32)           # (Cout, 1)

    # ---- column border masks (tiny; row masks are built in-kernel from iota) ----
    col = jnp.arange(HW, dtype=jnp.int32) % W
    cmask = jnp.stack([(col != 0), (col != W - 1)]).astype(jnp.float32)   # (2, HW)

    Bblk = block_images
    kernel = functools.partial(_color_aware_conv_kernel, W=W)
    out_flat = pl.pallas_call(
        kernel,
        out_shape=jax.ShapeDtypeStruct((N, Cout, HW), out_dtype),
        grid_spec=pltpu.PrefetchScalarGridSpec(
            num_scalar_prefetch=0,
            grid=(N // Bblk,),
            in_specs=[
                pl.BlockSpec((Bblk, Cin, HW), lambda n: (n, 0, 0)),
                pl.BlockSpec((Cout, Kpad), lambda n: (0, 0)),
                pl.BlockSpec((Cout, Cin), lambda n: (0, 0)),
                pl.BlockSpec((Cout, 1), lambda n: (0, 0)),
                pl.BlockSpec((2, HW), lambda n: (0, 0)),
            ],
            out_specs=pl.BlockSpec((Bblk, Cout, HW), lambda n: (n, 0, 0)),
            scratch_shapes=[pltpu.VMEM((Kpad, HW), jnp.float32)],
        ),
        compiler_params=pltpu.CompilerParams(
            dimension_semantics=("parallel",)),
    )(x_flat, w2_ext, w1s, b1s, cmask)

    # TODO(synk): for large H*W add a second grid axis over row tiles (1-row halo,
    # intra-tile rolls); size tiles against v7x's ~32 MiB scoped / 64 MiB physical VMEM
    # (set vmem_limit_bytes explicitly), not v5e/v6e's 128 MiB.
    return out_flat.reshape(N, Cout, H, W)


def reference(x_nchw, params):
    """Pure-JAX reference mirroring the PyTorch forward (NCHW, f32)."""
    w_conv, gamma, beta = params["w_conv"], params["gamma"], params["beta"]
    run_mean, run_var = params["running_mean"], params["running_var"]
    w1, b1 = params["w1"], params["b1"]
    N, Cin, H, W = x_nchw.shape

    out = lax.conv_general_dilated(
        x_nchw, w_conv, window_strides=(1, 1), padding=((1, 1), (1, 1)),
        dimension_numbers=("NCHW", "OIHW", "NCHW"),
        precision=lax.Precision.HIGHEST)
    eps = 1e-5
    scale = gamma / jnp.sqrt(run_var + eps)
    shift = beta - run_mean * scale
    out = out * scale[None, :, None, None] + shift[None, :, None, None]
    out = out * jax.nn.sigmoid(out)

    pooled = x_nchw.reshape(N, Cin, 8, H // 8, 8, W // 8).mean(axis=(3, 5))
    cs = jnp.einsum("nchw,oc->nohw", pooled, w1) + b1[None, :, None, None]
    cf = cs.mean(axis=(2, 3), keepdims=True)
    return out + 0.2 * cf


if __name__ == "__main__":
    N, Cin, H, W, Cout = 2, 4, 16, 16, 8
    key = jax.random.PRNGKey(0)
    keys = jax.random.split(key, 8)
    x = jax.random.normal(keys[0], (N, Cin, H, W), jnp.float32)
    params = dict(
        w_conv=0.1 * jax.random.normal(keys[1], (Cout, Cin, 3, 3), jnp.float32),
        gamma=jax.random.uniform(keys[2], (Cout,), jnp.float32, minval=0.5, maxval=1.5),
        beta=0.1 * jax.random.normal(keys[3], (Cout,), jnp.float32),
        running_mean=0.1 * jax.random.normal(keys[4], (Cout,), jnp.float32),
        running_var=jax.random.uniform(keys[5], (Cout,), jnp.float32, minval=0.5, maxval=1.5),
        w1=0.1 * jax.random.normal(keys[6], (Cout, Cin), jnp.float32),
        b1=0.1 * jax.random.normal(keys[7], (Cout,), jnp.float32),
    )

    out = jax.block_until_ready(color_aware_conv(x, params))
    ref = reference(x, params)

    assert out.shape == (N, Cout, H, W), out.shape
    # tolerance covers the bf16 quantization of the MXU matmul operands
    max_err = float(jnp.max(jnp.abs(out - ref)))
    assert jnp.allclose(out, ref, atol=5e-2, rtol=5e-2), max_err
    print("KERNEL_OK")
</pallas_src>

<mosaic_0001>
module attributes {stable_mosaic.version = 11 : i64} {
  func.func @_color_aware_conv_kernel(%arg0: i32, %arg1: memref<1x4x256xf32, #tpu.memory_space<vmem>>, %arg2: memref<8x40xbf16, #tpu.memory_space<vmem>>, %arg3: memref<8x4xf32, #tpu.memory_space<vmem>>, %arg4: memref<8x1xf32, #tpu.memory_space<vmem>>, %arg5: memref<2x256xf32, #tpu.memory_space<vmem>>, %arg6: memref<1x8x256xf32, #tpu.memory_space<vmem>>, %arg7: memref<40x256xf32, #tpu.memory_space<vmem>>) attributes {dimension_semantics = [#tpu.dimension_semantics<parallel>], iteration_bounds = array<i64: 2>, scalar_prefetch = 0 : i64, scratch_operands = 1 : i64, tpu.core_type = #tpu.core_type<tc>, window_params = [{transform_indices = @transform_0, window_bounds = array<i64: 1, 4, 256>}, {pipeline_mode = #tpu.pipeline_mode<synchronous>, transform_indices = @transform_1, window_bounds = array<i64: 8, 40>}, {pipeline_mode = #tpu.pipeline_mode<synchronous>, transform_indices = @transform_2, window_bounds = array<i64: 8, 4>}, {pipeline_mode = #tpu.pipeline_mode<synchronous>, transform_indices = @transform_3, window_bounds = array<i64: 8, 1>}, {pipeline_mode = #tpu.pipeline_mode<synchronous>, transform_indices = @transform_4, window_bounds = array<i64: 2, 256>}, {transform_indices = @transform_5, window_bounds = array<i64: 1, 8, 256>}]} {
    %c0 = arith.constant 0 : index
    %c0_0 = arith.constant 0 : index
    %0 = vector.load %arg2[%c0, %c0_0] : memref<8x40xbf16, #tpu.memory_space<vmem>>, vector<8x40xbf16>
    %c0_1 = arith.constant 0 : index
    %c0_2 = arith.constant 0 : index
    %1 = vector.load %arg5[%c0_1, %c0_2] : memref<2x256xf32, #tpu.memory_space<vmem>>, vector<2x256xf32>
    %2 = vector.extract_strided_slice %1 {offsets = [0, 0], sizes = [1, 256], strides = [1, 1]} : vector<2x256xf32> to vector<1x256xf32>
    %3 = vector.extract_strided_slice %1 {offsets = [1, 0], sizes = [1, 256], strides = [1, 1]} : vector<2x256xf32> to vector<1x256xf32>
    %4 = tpu.iota {dimensions = array<i32: 1>} : vector<1x256xi32>
    %c16_i32 = arith.constant 16 : i32
    %5 = vector.broadcast %c16_i32 : i32 to vector<1x256xi32>
    %6 = arith.cmpi sge, %4, %5 : vector<1x256xi32>
    %7 = arith.extui %6 : vector<1x256xi1> to vector<1x256xi32>
    %8 = arith.sitofp %7 : vector<1x256xi32> to vector<1x256xf32>
    %c240_i32 = arith.constant 240 : i32
    %9 = vector.broadcast %c240_i32 : i32 to vector<1x256xi32>
    %10 = arith.cmpi slt, %4, %9 : vector<1x256xi32>
    %11 = arith.extui %10 : vector<1x256xi1> to vector<1x256xi32>
    %12 = arith.sitofp %11 : vector<1x256xi32> to vector<1x256xf32>
    %cst = arith.constant 1.000000e+00 : f32
    %13 = vector.broadcast %cst : f32 to vector<4x256xf32>
    %c36 = arith.constant 36 : index
    %c0_3 = arith.constant 0 : index
    %14 = vector.load %arg7[%c36, %c0_3] : memref<40x256xf32, #tpu.memory_space<vmem>>, vector<4x256xf32>
    tpu.vector_store %arg7[%c36, %c0_3], %13 {strides = array<i32>} : memref<40x256xf32, #tpu.memory_space<vmem>>, vector<4x256xf32>,
    %c0_4 = arith.constant 0 : index
    %c0_5 = arith.constant 0 : index
    %c0_6 = arith.constant 0 : index
    %15 = vector.load %arg1[%c0_4, %c0_5, %c0_6] : memref<1x4x256xf32, #tpu.memory_space<vmem>>, vector<1x4x256xf32>
    %16 = vector.shape_cast %15 : vector<1x4x256xf32> to vector<4x256xf32>
    %c17_i32 = arith.constant 17 : i32
    %17 = tpu.dynamic_rotate %16 by %c17_i32 dim 1 : vector<4x256xf32>, i32 -> vector<4x256xf32>
    %18 = vector.broadcast %8 : vector<1x256xf32> to vector<4x256xf32>
    %19 = arith.mulf %17, %18 : vector<4x256xf32>
    %20 = vector.broadcast %2 : vector<1x256xf32> to vector<4x256xf32>
    %21 = arith.mulf %19, %20 : vector<4x256xf32>
    %c0_7 = arith.constant 0 : index
    %c0_8 = arith.constant 0 : index
    %22 = vector.load %arg7[%c0_7, %c0_8] : memref<40x256xf32, #tpu.memory_space<vmem>>, vector<4x256xf32>
    tpu.vector_store %arg7[%c0_7, %c0_8], %21 {strides = array<i32>} : memref<40x256xf32, #tpu.memory_space<vmem>>, vector<4x256xf32>,
    %c16_i32_9 = arith.constant 16 : i32
    %23 = tpu.dynamic_rotate %16 by %c16_i32_9 dim 1 : vector<4x256xf32>, i32 -> vector<4x256xf32>
    %24 = vector.broadcast %8 : vector<1x256xf32> to vector<4x256xf32>
    %25 = arith.mulf %23, %24 : vector<4x256xf32>
    %c4 = arith.constant 4 : index
    %c0_10 = arith.constant 0 : index
    %26 = vector.load %arg7[%c4, %c0_10] : memref<40x256xf32, #tpu.memory_space<vmem>>, vector<4x256xf32>
    tpu.vector_store %arg7[%c4, %c0_10], %25 {strides = array<i32>} : memref<40x256xf32, #tpu.memory_space<vmem>>, vector<4x256xf32>,
    %c15_i32 = arith.constant 15 : i32
    %27 = tpu.dynamic_rotate %16 by %c15_i32 dim 1 : vector<4x256xf32>, i32 -> vector<4x256xf32>
    %28 = vector.broadcast %8 : vector<1x256xf32> to vector<4x256xf32>
    %29 = arith.mulf %27, %28 : vector<4x256xf32>
    %30 = vector.broadcast %3 : vector<1x256xf32> to vector<4x256xf32>
    %31 = arith.mulf %29, %30 : vector<4x256xf32>
    %c8 = arith.constant 8 : index
    %c0_11 = arith.constant 0 : index
    %32 = vector.load %arg7[%c8, %c0_11] : memref<40x256xf32, #tpu.memory_space<vmem>>, vector<4x256xf32>
    tpu.vector_store %arg7[%c8, %c0_11], %31 {strides = array<i32>} : memref<40x256xf32, #tpu.memory_space<vmem>>, vector<4x256xf32>,
    %c1_i32 = arith.constant 1 : i32
    %33 = tpu.dynamic_rotate %16 by %c1_i32 dim 1 : vector<4x256xf32>, i32 -> vector<4x256xf32>
    %34 = vector.broadcast %2 : vector<1x256xf32> to vector<4x256xf32>
    %35 = arith.mulf %33, %34 : vector<4x256xf32>
    %c12 = arith.constant 12 : index
    %c0_12 = arith.constant 0 : index
    %36 = vector.load %arg7[%c12, %c0_12] : memref<40x256xf32, #tpu.memory_space<vmem>>, vector<4x256xf32>
    tpu.vector_store %arg7[%c12, %c0_12], %35 {strides = array<i32>} : memref<40x256xf32, #tpu.memory_space<vmem>>, vector<4x256xf32>,
    %c16 = arith.constant 16 : index
    %c0_13 = arith.constant 0 : index
    %37 = vector.load %arg7[%c16, %c0_13] : memref<40x256xf32, #tpu.memory_space<vmem>>, vector<4x256xf32>
    tpu.vector_store %arg7[%c16, %c0_13], %16 {strides = array<i32>} : memref<40x256xf32, #tpu.memory_space<vmem>>, vector<4x256xf32>,
    %c255_i32 = arith.constant 255 : i32
    %38 = tpu.dynamic_rotate %16 by %c255_i32 dim 1 : vector<4x256xf32>, i32 -> vector<4x256xf32>
    %39 = vector.broadcast %3 : vector<1x256xf32> to vector<4x256xf32>
    %40 = arith.mulf %38, %39 : vector<4x256xf32>
    %c20 = arith.constant 20 : index
    %c0_14 = arith.constant 0 : index
    %41 = vector.load %arg7[%c20, %c0_14] : memref<40x256xf32, #tpu.memory_space<vmem>>, vector<4x256xf32>
    tpu.vector_store %arg7[%c20, %c0_14], %40 {strides = array<i32>} : memref<40x256xf32, #tpu.memory_space<vmem>>, vector<4x256xf32>,
    %c241_i32 = arith.constant 241 : i32
    %42 = tpu.dynamic_rotate %16 by %c241_i32 dim 1 : vector<4x256xf32>, i32 -> vector<4x256xf32>
    %43 = vector.broadcast %12 : vector<1x256xf32> to vector<4x256xf32>
    %44 = arith.mulf %42, %43 : vector<4x256xf32>
    %45 = vector.broadcast %2 : vector<1x256xf32> to vector<4x256xf32>
    %46 = arith.mulf %44, %45 : vector<4x256xf32>
    %c24 = arith.constant 24 : index
    %c0_15 = arith.constant 0 : index
    %47 = vector.load %arg7[%c24, %c0_15] : memref<40x256xf32, #tpu.memory_space<vmem>>, vector<4x256xf32>
    tpu.vector_store %arg7[%c24, %c0_15], %46 {strides = array<i32>} : memref<40x256xf32, #tpu.memory_space<vmem>>, vector<4x256xf32>,
    %c240_i32_16 = arith.constant 240 : i32
    %48 = tpu.dynamic_rotate %16 by %c240_i32_16 dim 1 : vector<4x256xf32>, i32 -> vector<4x256xf32>
    %49 = vector.broadcast %12 : vector<1x256xf32> to vector<4x256xf32>
    %50 = arith.mulf %48, %49 : vector<4x256xf32>
    %c28 = arith.constant 28 : index
    %c0_17 = arith.constant 0 : index
    %51 = vector.load %arg7[%c28, %c0_17] : memref<40x256xf32, #tpu.memory_space<vmem>>, vector<4x256xf32>
    tpu.vector_store %arg7[%c28, %c0_17], %50 {strides = array<i32>} : memref<40x256xf32, #tpu.memory_space<vmem>>, vector<4x256xf32>,
    %c239_i32 = arith.constant 239 : i32
    %52 = tpu.dynamic_rotate %16 by %c239_i32 dim 1 : vector<4x256xf32>, i32 -> vector<4x256xf32>
    %53 = vector.broadcast %12 : vector<1x256xf32> to vector<4x256xf32>
    %54 = arith.mulf %52, %53 : vector<4x256xf32>
    %55 = vector.broadcast %3 : vector<1x256xf32> to vector<4x256xf32>
    %56 = arith.mulf %54, %55 : vector<4x256xf32>
    %c32 = arith.constant 32 : index
    %c0_18 = arith.constant 0 : index
    %57 = vector.load %arg7[%c32, %c0_18] : memref<40x256xf32, #tpu.memory_space<vmem>>, vector<4x256xf32>
    tpu.vector_store %arg7[%c32, %c0_18], %56 {strides = array<i32>} : memref<40x256xf32, #tpu.memory_space<vmem>>, vector<4x256xf32>,
    %c0_19 = arith.constant 0 : index
    %c0_20 = arith.constant 0 : index
    %58 = vector.load %arg7[%c0_19, %c0_20] : memref<40x256xf32, #tpu.memory_space<vmem>>, vector<40x256xf32>
    %59 = arith.truncf %58 : vector<40x256xf32> to vector<40x256xbf16>
    %cst_21 = arith.constant dense<0.000000e+00> : vector<8x256xf32>
    %60 = tpu.matmul %0, %59, %cst_21 {dimension_numbers = #tpu.dot_dimension_numbers<[1], [0], [0], [1], [0, 0, 1, 1], [], []>} : vector<8x40xbf16>, vector<40x256xbf16>, vector<8x256xf32> -> vector<8x256xf32>
    %61 = arith.negf %60 : vector<8x256xf32>
    %62 = math.exp %61 : vector<8x256xf32>
    %cst_22 = arith.constant 1.000000e+00 : f32
    %63 = vector.broadcast %cst_22 : f32 to vector<8x256xf32>
    %64 = arith.addf %63, %62 : vector<8x256xf32>
    %65 = arith.divf %63, %64 : vector<8x256xf32>
    %66 = arith.mulf %60, %65 : vector<8x256xf32>
    %c0_23 = arith.constant 0 : index
    %c0_24 = arith.constant 0 : index
    %67 = vector.load %arg3[%c0_23, %c0_24] : memref<8x4xf32, #tpu.memory_space<vmem>>, vector<8x4xf32>
    %cst_25 = arith.constant dense<0.000000e+00> : vector<8x256xf32>
    %68 = tpu.matmul %67, %16, %cst_25 {dimension_numbers = #tpu.dot_dimension_numbers<[1], [0], [0], [1], [0, 0, 1, 1], [], []>} : vector<8x4xf32>, vector<4x256xf32>, vector<8x256xf32> -> vector<8x256xf32>
    %cst_26 = arith.constant dense<0.000000e+00> : vector<8xf32>
    %69 = vector.multi_reduction <add>, %68, %cst_26 [1] : vector<8x256xf32> to vector<8xf32>
    %70 = vector.shape_cast %69 : vector<8xf32> to vector<8x1xf32>
    %cst_27 = arith.constant 2.560000e+02 : f32
    %71 = vector.broadcast %cst_27 : f32 to vector<8x1xf32>
    %72 = arith.divf %70, %71 : vector<8x1xf32>
    %c0_28 = arith.constant 0 : index
    %c0_29 = arith.constant 0 : index
    %73 = vector.load %arg4[%c0_28, %c0_29] : memref<8x1xf32, #tpu.memory_space<vmem>>, vector<8x1xf32>
    %74 = arith.addf %72, %73 : vector<8x1xf32>
    %75 = vector.broadcast %74 : vector<8x1xf32> to vector<8x256xf32>
    %76 = arith.addf %66, %75 : vector<8x256xf32>
    %c0_30 = arith.constant 0 : index
    %c0_31 = arith.constant 0 : index
    %c0_32 = arith.constant 0 : index
    %77 = vector.load %arg6[%c0_30, %c0_31, %c0_32] : memref<1x8x256xf32, #tpu.memory_space<vmem>>, vector<1x8x256xf32>
    %78 = vector.shape_cast %77 : vector<1x8x256xf32> to vector<8x256xf32>
    %79 = vector.shape_cast %76 : vector<8x256xf32> to vector<1x8x256xf32>
    tpu.vector_store %arg6[%c0_30, %c0_31, %c0_32], %79 {strides = array<i32>} : memref<1x8x256xf32, #tpu.memory_space<vmem>>, vector<1x8x256xf32>,
    return
  }
  func.func @transform_0(%arg0: i32) -> (i32, i32, i32) {
    %c0_i32 = arith.constant 0 : i32
    %c0_i32_0 = arith.constant 0 : i32
    %c0_i32_1 = arith.constant 0 : i32
    return %arg0, %c0_i32, %c0_i32_0 : i32, i32, i32
  }
  func.func @transform_1(%arg0: i32) -> (i32, i32) {
    %c0_i32 = arith.constant 0 : i32
    %c0_i32_0 = arith.constant 0 : i32
    %c0_i32_1 = arith.constant 0 : i32
    return %c0_i32, %c0_i32_0 : i32, i32
  }
  func.func @transform_2(%arg0: i32) -> (i32, i32) {
    %c0_i32 = arith.constant 0 : i32
    %c0_i32_0 = arith.constant 0 : i32
    %c0_i32_1 = arith.constant 0 : i32
    return %c0_i32, %c0_i32_0 : i32, i32
  }
  func.func @transform_3(%arg0: i32) -> (i32, i32) {
    %c0_i32 = arith.constant 0 : i32
    %c0_i32_0 = arith.constant 0 : i32
    %c0_i32_1 = arith.constant 0 : i32
    return %c0_i32, %c0_i32_0 : i32, i32
  }
  func.func @transform_4(%arg0: i32) -> (i32, i32) {
    %c0_i32 = arith.constant 0 : i32
    %c0_i32_0 = arith.constant 0 : i32
    %c0_i32_1 = arith.constant 0 : i32
    return %c0_i32, %c0_i32_0 : i32, i32
  }
  func.func @transform_5(%arg0: i32) -> (i32, i32, i32) {
    %c0_i32 = arith.constant 0 : i32
    %c0_i32_0 = arith.constant 0 : i32
    %c0_i32_1 = arith.constant 0 : i32
    return %arg0, %c0_i32, %c0_i32_0 : i32, i32, i32
  }
}

</mosaic_0001>

<bundles_post_ra>
// kernel: tpu_custom_call.1
= control target key start
LH: loop header
LB: loop body
LE: loop exit
PB: predicated region body
PF: predicated region fallthrough
CT: control target
= control target key end

     0   :  { %10 = vsyncpa [#allocation4], 0  ;;  %s1065_s0 = inlined_call_operand.vmem [shape: f32[2,4,256], index: 0, kind: input, shape index: {}]   ;;  %s1066_s1 = inlined_call_operand.vmem [shape: bf16[8,40], index: 1, kind: input, shape index: {}]   ;;  %s1067_s2 = inlined_call_operand.vmem [shape: f32[8,4], index: 2, kind: input, shape index: {}]   ;;  %s1068_s3 = inlined_call_operand.vmem [shape: f32[8,1], index: 3, kind: input, shape index: {}]   ;;  %s1069_s4 = inlined_call_operand.hbm [shape: f32[2,256], index: 4, kind: input, shape index: {}]   ;;  %s1070_s5 = inlined_call_operand.hbm [shape: f32[2,8,256], index: 5, kind: output, shape index: {}]  }
   0x1   :  { %11 = vsyncpa [#allocation5], 0 }
   0x2   :  { %13 = vsyncpa [#allocation5 + $0x1], 0  ;;  %s936_s18 = smov 0   ;;  %s938_s19 = smov 0  }
   0x3   :  { %s940_s20 = smov 0   ;;  %s942_s21 = smov 0  }
   0x4 LB: > { %s957_s22 = sadd.s32 4294967295, %s891_s21   ;;  %s695_s23 = sadd.s32 4294967294, %s891_s21   ;;  %s891_s21 = sphi %s942_s21, %s1076_s21   ;;  %s887_s20 = sphi %s940_s20, %s1075_s20   ;;  %s883_s19 = sphi %s938_s19, %s1074_s19   ;;  %s879_s18 = sphi %s936_s18, %s1073_s18  }
   0x5   : > { %s961_s24 = sadd.s32 1, %s891_s21   ;;  %s136_s25 = sadd.s32 1, %s887_s20 }
   0x6   : > { %s133_s26 = ssub.s32 %s891_s21, %s961_s24  ;;  %p146_p0 = scmp.ne.s32.totalorder %s887_s20, %s883_s19 }
   0x7   : > { %p134_p1 = scmp.eq.s32.totalorder %s133_s26, 0  ;;  %p147_p2 = scmp.eq.s32.totalorder %s957_s22, 1 }
   0x8   : > { %p152_p3 = scmp.ne.s32.totalorder %s883_s19, %s879_s18  ;;  %p153_p4 = scmp.eq.s32.totalorder %s695_s23, 1 }
   0x9   : > { %s972_s27 = scalar_select %p134_p1, %s887_s20, %s136_s25  }
   0xa   : > { %p974_p5 = por %p147_p2, %p146_p0  ;;  %p978_p6 = por %p153_p4, %p152_p3 }
   0xb   : > { %p696_p7 = scmp.ge.s32.totalorder %s891_s21, 1  ;;  %p160_p8 = scmp.lt.s32.totalorder %s891_s21, 3 }
   0xc   : > { %p735_p9 = scmp.eq.s32.totalorder %s957_s22, 0  ;;  %s181_s7 = sshll.u32 %s1069_s4, 4  ;;  %s182_s7 = int_to_ptr.hbm [resolvable:$true] %s181_s7 }
   0xd   : > { %p161_p10 = pnand %p696_p7, %p160_p8  ;;  %s893_s8 = smov [#allocation3]  }
   0xe   : > { %s183_s9 = sshll.u32 %s893_s8, 4  ;;  %s184_s9 = int_to_ptr.vmem [resolvable:$true] %s183_s9 }
   0xf   : > { %p727_p11 = pneg %p161_p10  ;;  %204 = sbr.rel (%p161_p10) target bundleno = 461 (0x1cd), region = 40 }
  0x11   : > { %p728_p12 = pnand %p735_p9, %p727_p11 }
  0x13   : > { %730 = dma.hbm_to_vmem [thread:$0]  (!%p728_p12), %s182_s7, 64, %s184_s9, [#allocation4]  }
  0x14   : > { %870 = dma.done.wait (%p735_p9), [#allocation4], 64  }
  0x15   : > { %872 = vsyncadd (%p735_p9), [#allocation4], 4294967232  ;;  %p233_p13 = scmp.lt.s32.totalorder %s957_s22, 1  ;;  %s894_s15 = smov 17   ;;  %vm460_vm0 = vcmask 1043456   ;;  %v533_v19 = vld [vmem:[%s1067_s2] sm:$0xff]  ;;  %v241_v22 = vlaneseq }
  0x16   : > { %s895_s16 = smov 16   ;;  %s896_s17 = smov 127   ;;  %vm537_vm1 = vcmask 31744   ;;  %v240_v24 = vld [vmem:[#allocation3] sm:$0xf]  ;;  %v902_v27 = vmov 0.0  }
  0x17   : > { %s234_s10 = scalar_select %p233_p13, %s957_s22, 1  ;;  %v998_v23 = vand.u32 127, %v241_v22  ;;  %v276_v25 = vperm.slane %v240_v24, 2  ;;  %v275_v26 = vperm.slane %v240_v24, 0  ;;  %v321_v48 = vperm.slane %v240_v24, 1 }
  0x18   : > { %s897_s23 = smov 113   ;;  %s898_s25 = smov 112   ;;  %v322_v49 = vperm.slane %v240_v24, 3  ;;  %vm456_vm12 = vcmask 326656  }
  0x19   : > { %s719_s11 = sshll.u32 %s234_s10, 3  ;;  %s899_s26 = smov 111   ;;  %vm244_vm2 = vcmp.ge.s32.totalorder %v998_v23, 16  ;;  %vm269_vm3 = vcmp.lt.s32.totalorder %v998_v23, 17  ;;  %v1004_v31 = vperm.slane %v276_v25, 0  ;;  %v1007_v35 = vperm.slane %v275_v26, 0 }
  0x1a   : > { %s237_s14 = scalar_lea.vmem %s1065_s0, %s719_s11  ;;  %s900_s30 = smov 15   ;;  %v1002_v28 = vsel %vm244_vm2, 1.0, %v902_v27  ;;  %vm294_vm4 = vcmp.lt.s32.totalorder %v998_v23, 16  ;;  %v243_v47 = vadd.s32 128, %v998_v23  ;;  %vm369_vm6 = vcmp.lt.s32.totalorder %v998_v23, 127 }
  0x1b   : > { %v258_v0 = vld [vmem:[%s237_s14] sm:$0xff]  ;;  %s901_s6 = smov 1   ;;  %vm391_vm7 = vcmp.lt.s32.totalorder %v998_v23, 113  ;;  %v325_v54 = vperm.slane %v321_v48, 1  ;;  %v326_v55 = vperm.slane %v322_v49, 1  ;;  %vm409_vm8 = vcmp.lt.s32.totalorder %v998_v23, 112 }
  0x1c   : > { %260 = vst [vmem:[#allocation1] ss:$2 sm:$0xff] %v258_v0  ;;  %vm251_vm5 = vcmp.lt.s32.totalorder %v243_v47, 240  ;;  %vm431_vm9 = vcmp.lt.s32.totalorder %v998_v23, 111  ;;  %vm316_vm10 = vcmp.lt.s32.totalorder %v998_v23, 15  ;;  %vm340_vm11 = vcmp.lt.s32.totalorder %v998_v23, 1 }
  0x1d   : > { %v705_v51 = vsel %vm251_vm5, 1.0, %v902_v27  ;;  %s230_s13 = sand.u32 1, %s883_s19   ;;  %s845_s10 = scalar_lea.hbm %s1070_s5, 32 }
  0x1e   : > { %s701_s14 = sshll.u32 %s230_s13, 4 }
  0x23   : > { %v262_v1 = vld.sshfl [vmem:[#allocation1 + $0x8] sm:$0xff pattern:$0x75316420]  ;;  %v261_v2 = vld.sshfl [vmem:[#allocation1] sm:$0xff pattern:$0x75316420] }
  0x24   : > { %267 = vrot.lane.b32.xlu0 %v262_v1, %s894_s15  ;;  %285 = vst [vmem:[#allocation1] ss:$2 sm:$0xff] %v258_v0  ;;  %265 = vrot.lane.b32.xlu2 %v261_v2, %s894_s15  ;;  %s720_s15 = sshll.u32 %s957_s22, 4  ;;  %s608_s22 = scalar_lea.sflag [#allocation5], %s230_s13 }
  0x2b   : > { %v286_v3 = vld.sshfl [vmem:[#allocation1] sm:$0xff pattern:$0x75316420]  ;;  %v287_v4 = vld.sshfl [vmem:[#allocation1 + $0x8] sm:$0xff pattern:$0x75316420] }
  0x2c   : > { %307 = vst [vmem:[#allocation1] ss:$2 sm:$0xff] %v258_v0  ;;  %290 = vrot.lane.b32.xlu1 %v286_v3, %s895_s16  ;;  %292 = vrot.lane.b32.xlu2 %v287_v4, %s895_s16  ;;  %v903_v4 = vmov 1.0  }
  0x2d   : > { %257 = vst [vmem:[#allocation2 + $0x40] sm:$0xf0] %v903_v4 }
  0x2e   : > { %256 = vst [vmem:[#allocation2 + $0x20] sm:$0xf0] %v903_v4 }
  0x33   : > { %v308_v5 = vld.sshfl [vmem:[#allocation1] sm:$0xff pattern:$0x75316420]  ;;  %v309_v6 = vld.sshfl [vmem:[#allocation1 + $0x8] sm:$0xff pattern:$0x75316420] }
  0x34   : > { %331 = vst [vmem:[#allocation1] ss:$2 sm:$0xff] %v258_v0 }
  0x3b   : > { %v332_v7 = vld.sshfl [vmem:[#allocation1] sm:$0xff pattern:$0x75316420]  ;;  %v333_v8 = vld.sshfl [vmem:[#allocation1 + $0x8] sm:$0xff pattern:$0x75316420] }
  0x3c   : > { %353 = vst [vmem:[#allocation1] ss:$2 sm:$0xff] %v258_v0 }
  0x43   : > { %v354_v9 = vld.sshfl [vmem:[#allocation1] sm:$0xff pattern:$0x75316420]  ;;  %v355_v10 = vld.sshfl [vmem:[#allocation1 + $0x8] sm:$0xff pattern:$0x75316420] }
  0x44   : > { %360 = vst [vmem:[#allocation1] ss:$2 sm:$0xff] %v258_v0 }
  0x45   : > { %358 = vst [vmem:[#allocation2 + $0x48] sm:$0xf] %v354_v9 }
  0x46   : > { %359 = vst [vmem:[#allocation2 + $0x10] sm:$0xf] %v355_v10 }
  0x4b   : > { %v361_v11 = vld.sshfl [vmem:[#allocation1] sm:$0xff pattern:$0x75316420]  ;;  %v362_v12 = vld.sshfl [vmem:[#allocation1 + $0x8] sm:$0xff pattern:$0x75316420] }
  0x4c   : > { %382 = vst [vmem:[#allocation1] ss:$2 sm:$0xff] %v258_v0  ;;  %365 = vrot.lane.b32.xlu1 %v361_v11, %s896_s17 }
  0x53   : > { %v383_v13 = vld.sshfl [vmem:[#allocation1] sm:$0xff pattern:$0x75316420]  ;;  %v384_v14 = vld.sshfl [vmem:[#allocation1 + $0x8] sm:$0xff pattern:$0x75316420] }
  0x54   : > { %400 = vst [vmem:[#allocation1] ss:$2 sm:$0xff] %v258_v0  ;;  %367 = vrot.lane.b32.xlu1 %v362_v12, %s896_s17  ;;  %387 = vrot.lane.b32.xlu2 %v383_v13, %s897_s23 }
  0x5b   : > { %v401_v15 = vld.sshfl [vmem:[#allocation1] sm:$0xff pattern:$0x75316420]  ;;  %v402_v16 = vld.sshfl [vmem:[#allocation1 + $0x8] sm:$0xff pattern:$0x75316420] }
  0x5c   : > { %405 = vrot.lane.b32.xlu0 %v401_v15, %s898_s25  ;;  %422 = vst [vmem:[#allocation1] ss:$2 sm:$0xff] %v258_v0  ;;  %407 = vrot.lane.b32.xlu1 %v402_v16, %s898_s25  ;;  %s232_s25 = scalar_lea.vmem [#allocation6], %s701_s14 }
  0x5d   : > { %389 = vrot.lane.b32.xlu2 %v384_v14, %s897_s23  ;;  %s619_s23 = scalar_lea.hbm %s1070_s5, %s720_s15 }
  0x63   : > { %v423_v17 = vld.sshfl [vmem:[#allocation1] sm:$0xff pattern:$0x75316420]  ;;  %v424_v18 = vld.sshfl [vmem:[#allocation1 + $0x8] sm:$0xff pattern:$0x75316420] }
  0x64   : > { %427 = vrot.lane.b32.xlu0 %v423_v17, %s899_s26  ;;  %534 = vst [vmem:[#allocation1] ss:$2 sm:$0xff] %v258_v0  ;;  %314 = vrot.lane.b32.xlu1 %v309_v6, %s900_s30 }
  0x65   : > { %336 = vrot.lane.b32.xlu2 %v332_v7, %s901_s6 }
  0x6b   : > { %v535_v20 = vld.sshfl [vmem:[#allocation1] sm:$0xff pattern:$0x75316420]  ;;  %v536_v21 = vld.sshfl [vmem:[#allocation1 + $0x8] sm:$0xff pattern:$0x75316420] }
  0x6c   : > { %429 = vrot.lane.b32.xlu0 %v424_v18, %s899_s26  ;;  %710 = vmatpush.msk.msra.mxu2 %vm460_vm0, %v535_v20  ;;  %s621_s26 = sshll.u32 %s232_s25, 4  ;;  %s622_s26 = int_to_ptr.vmem [resolvable:$true] %s621_s26 }
  0x6d   : > { %712 = vmatpush.msk.msra.mxu3 %vm460_vm0, %v536_v21  ;;  %711 = vmatmul.msk.f32.vlgmr.msra.gmra.mxu2 %vm537_vm1, %v533_v19 }
  0x6e   : > { %713 = vmatmul.msk.f32.vlgmr.msra.gmra.mxu3 %vm537_vm1, %v533_v19 }
  0x74   : > { %312 = vrot.lane.b32.xlu0 %v308_v5, %s900_s30  ;;  %s623_s30 = sshll.u32 %s619_s23, 4  ;;  %s624_s30 = int_to_ptr.hbm [resolvable:$true] %s623_s30 }
  0x7c   : > { %338 = vrot.lane.b32.xlu0 %v333_v8, %s901_s6  ;;  %s839_s6 = sshra.s32 %s624_s30, 4  ;;  %s840_s6 = int_to_ptr.hbm [resolvable:$true] %s839_s6 }
  0x7d   : > { %s841_s7 = scalar_lea.hbm %s840_s6, 16  ;;  %p846_p3 = scmp.lt.s32.totalorder %s840_s6, %s1070_s5 }
  0x7e   : > { %v266_v30 = vpop.permute.xlu2 %265  ;;  %p842_p0 = scmp.ne.s32.totalorder %s840_s6, %s841_s7  ;;  %p847_p4 = scmp.lt.s32.totalorder %s845_s10, %s841_s7 }
  0x80   : > { %p843_p1 = pnand %p842_p0, %p974_p5  ;;  %p848_p7 = por %p847_p4, %p846_p3 }
  0x82   : > { %p844_p2 = pneg %p843_p1 }
  0x84   : > { %p849_p8 = pnand %p848_p7, %p844_p2 }
  0x86   : > { %v293_v39 = vpop.permute.xlu2 %292 }
  0x96   : > { %v268_v29 = vpop.permute.xlu0 %267 }
  0x97   : > { %v270_v32 = vsel %vm269_vm3, %v266_v30, %v268_v29  ;;  %v271_v33 = vsel %vm269_vm3, %v268_v29, %v266_v30 }
  0x98   : > { %v272_v34 = vmul.f32 %v1002_v28, %v271_v33  ;;  %v282_v36 = vmul.f32 %v1004_v31, %v270_v32 }
  0x9a   : > { %v281_v37 = vmul.f32 %v1007_v35, %v272_v34  ;;  %284 = vst [vmem:[#allocation2] sm:$0xf] %v282_v36 }
  0x9c   : > { %283 = vst [vmem:[#allocation2 + $0x8] sm:$0xf] %v281_v37 }
  0x9e   : > { %v291_v38 = vpop.permute.xlu1 %290 }
  0x9f   : > { %v295_v40 = vsel %vm294_vm4, %v291_v38, %v293_v39  ;;  %v296_v41 = vsel %vm294_vm4, %v293_v39, %v291_v38 }
  0xa0   : > { %v297_v42 = vmul.f32 %v1002_v28, %v296_v41  ;;  %v302_v43 = vrot.slane %v295_v40, 4 }
  0xa2   : > { %v301_v44 = vrot.slane %v297_v42, 4  ;;  %306 = vst [vmem:[#allocation2] sm:$0xf0] %v302_v43 }
  0xa4   : > { %305 = vst [vmem:[#allocation2 + $0x8] sm:$0xf0] %v301_v44 }
  0xab   : > { %v440_v49 = vld [vmem:[#allocation2 + $0x8] sm:$0xff] }
  0xae   : > { %v388_v45 = vpop.permute.xlu2 %387 }
  0xb7   : > { %v390_v50 = vpop.permute.xlu2 %389 }
  0xb8   : > { %v392_v52 = vsel %vm391_vm7, %v388_v45, %v390_v50  ;;  %v393_v53 = vsel %vm391_vm7, %v390_v50, %v388_v45  ;;  %v441_v50 = vld [vmem:[#allocation2] sm:$0xff] }
  0xb9   : > { %v395_v57 = vmul.f32 %v705_v51, %v393_v53  ;;  %v396_v58 = vmul.f32 %v392_v52, %v1007_v35 }
  0xbb   : > { %v397_v63 = vmul.f32 %v395_v57, %v1004_v31  ;;  %398 = vst [vmem:[#allocation2 + $0x30] sm:$0xf] %v396_v58 }
  0xbd   : > { %399 = vst [vmem:[#allocation2 + $0x28] sm:$0xf] %v397_v63 }
  0xbe   : > { %v366_v46 = vpop.permute.xlu1 %365 }
  0xbf   : > { %v337_v32 = vpop.permute.xlu2 %336 }
  0xc6   : > { %v368_v56 = vpop.permute.xlu1 %367 }
  0xc7   : > { %v370_v59 = vsel %vm369_vm6, %v366_v46, %v368_v56  ;;  %v371_v60 = vsel %vm369_vm6, %v368_v56, %v366_v46 }
  0xc8   : > { %v372_v61 = vmul.f32 %v370_v59, %v325_v54  ;;  %v373_v62 = vmul.f32 %v371_v60, %v326_v55 }
  0xca   : > { %v376_v0 = vrot.slane %v372_v61, 4  ;;  %v377_v1 = vrot.slane %v373_v62, 4  ;;  %v596_v62 = vld [vmem:[%s1068_s3] sm:$0xff] }
  0xcc   : > { %380 = vst [vmem:[#allocation2 + $0x48] sm:$0xf0] %v376_v0 }
  0xcd   : > { %381 = vst [vmem:[#allocation2 + $0x10] sm:$0xf0] %v377_v1 }
  0xce   : > { %v406_v2 = vpop.permute.xlu0 %405  ;;  %v408_v3 = vpop.permute.xlu1 %407 }
  0xcf   : > { %v410_v5 = vsel %vm409_vm8, %v406_v2, %v408_v3  ;;  %v411_v6 = vsel %vm409_vm8, %v408_v3, %v406_v2 }
  0xd0   : > { %v413_v7 = vmul.f32 %v705_v51, %v411_v6  ;;  %v416_v8 = vrot.slane %v410_v5, 4 }
  0xd2   : > { %v417_v9 = vrot.slane %v413_v7, 4  ;;  %420 = vst [vmem:[#allocation2 + $0x30] sm:$0xf0] %v416_v8 }
  0xd3   : > { %v444_v27 = vld [vmem:[#allocation2 + $0x48] sm:$0xff] }
  0xd4   : > { %421 = vst [vmem:[#allocation2 + $0x28] sm:$0xf0] %v417_v9  ;;  %v445_v36 = vld [vmem:[#allocation2 + $0x10] sm:$0xff] }
  0xd6   : > { %v428_v10 = vpop.permute.xlu0 %427  ;;  %v315_v17 = vpop.permute.xlu1 %314 }
  0xd9   : > { %v446_v29 = vld [vmem:[#allocation2 + $0x30] sm:$0xff] }
  0xda   : > { %v452_v38 = vpack.c.bf16 %v446_v29, %v444_v27 }
  0xdb   : > { %v447_v37 = vld [vmem:[#allocation2 + $0x28] sm:$0xff] }
  0xdc   : > { %v453_v42 = vpack.c.bf16 %v447_v37, %v445_v36 }
  0xde   : > { %v430_v11 = vpop.permute.xlu0 %429 }
  0xdf   : > { %v432_v12 = vsel %vm431_vm9, %v428_v10, %v430_v11  ;;  %v433_v13 = vsel %vm431_vm9, %v430_v11, %v428_v10 }
  0xe0   : > { %v435_v14 = vmul.f32 %v705_v51, %v433_v13  ;;  %v436_v15 = vmul.f32 %v432_v12, %v325_v54 }
  0xe2   : > { %v437_v16 = vmul.f32 %v435_v14, %v326_v55  ;;  %438 = vst [vmem:[#allocation2 + $0x20] sm:$0xf] %v436_v15 }
  0xe4   : > { %439 = vst [vmem:[#allocation2 + $0x40] sm:$0xf] %v437_v16 }
  0xe6   : > { %v313_v18 = vpop.permute.xlu0 %312 }
  0xe7   : > { %v317_v19 = vsel %vm316_vm10, %v313_v18, %v315_v17  ;;  %v318_v20 = vsel %vm316_vm10, %v315_v17, %v313_v18 }
  0xe8   : > { %v319_v21 = vmul.f32 %v1002_v28, %v318_v20  ;;  %v328_v22 = vmul.f32 %v326_v55, %v317_v19  ;;  %v905_v55 = vmov 256.0  }
  0xe9   : > { %v448_v24 = vld [vmem:[#allocation2 + $0x20] sm:$0xff]  ;;  %785 = vrcp.f32 %v905_v55 }
  0xea   : > { %v327_v25 = vmul.f32 %v325_v54, %v319_v21  ;;  %330 = vst [vmem:[#allocation2 + $0x18] sm:$0xf] %v328_v22  ;;  %v454_v26 = vpack.c.bf16 %v448_v24, %v448_v24 }
  0xeb   : > { %v449_v30 = vld [vmem:[#allocation2 + $0x40] sm:$0xff] }
  0xec   : > { %329 = vst [vmem:[#allocation2 + $0x38] sm:$0xf] %v327_v25  ;;  %v455_v33 = vpack.c.bf16 %v449_v30, %v449_v30  ;;  %v462_v34 = vsel %vm460_vm0, %v454_v26, 0 }
  0xed   : > { %472 = vmatpush.bf16.msra.mxu0 %v462_v34 }
  0xee   : > { %v339_v28 = vpop.permute.xlu0 %338  ;;  %v465_v39 = vsel %vm460_vm0, %v455_v33, 0 }
  0xef   : > { %v341_v40 = vsel %vm340_vm11, %v337_v32, %v339_v28  ;;  %v342_v41 = vsel %vm340_vm11, %v339_v28, %v337_v32  ;;  %485 = vmatpush.bf16.msra.mxu1 %v465_v39  ;;  %v786_v56 = vpop.eup %785 }
  0xf0   : > { %v343_v43 = vmul.f32 %v342_v41, %v1007_v35  ;;  %v344_v44 = vmul.f32 %v341_v40, %v1004_v31  ;;  %v562_v23 = vpop.f32.mrf.mxu2  ;;  %v239_v31 = vld [vmem:[%s1066_s1] sm:$0xf]  ;;  %v904_v35 = vmov 0   ;;  %v589_v57 = vmul.f32 256.0, %v786_v56 }
  0xf1   : > { %v582_v45 = vpop.f32.mrf.mxu3  ;;  %473 = vmatpush.bf16.msra.mxu0 %v452_v38  ;;  %783 = vset.pattern.permute.xlu2 %v904_v35  ;;  %vm593_vm13 = vweird.f32 %v786_v56 }
  0xf2   : > { %v347_v46 = vrot.slane %v343_v43, 4  ;;  %v348_v47 = vrot.slane %v344_v44, 4  ;;  %v585_v48 = vadd.f32 %v582_v45, %v562_v23  ;;  %784 = vset.pattern.permute.xlu0 %v904_v35  ;;  %v590_v58 = vsub.f32 1.0, %v589_v57 }
  0xf3   : > { %486 = vmatpush.bf16.msra.mxu1 %v453_v42 }
  0xf4   : > { %351 = vst [vmem:[#allocation2 + $0x38] sm:$0xf0] %v347_v46  ;;  %586 = vadd.xlane.f32.xlu1 %v585_v48  ;;  %v591_v59 = vmul.f32 %v786_v56, %v590_v58 }
  0xf5   : > { %352 = vst [vmem:[#allocation2 + $0x18] sm:$0xf0] %v348_v47 }
  0xf6   : > { %v592_v60 = vadd.f32 %v786_v56, %v591_v59 }
  0xf8   : > { %v594_v61 = vsel %vm593_vm13, %v786_v56, %v592_v60 }
  0xfb   : > { %v442_v51 = vld [vmem:[#allocation2 + $0x38] sm:$0xff] }
  0xfc   : > { %v443_v52 = vld [vmem:[#allocation2 + $0x18] sm:$0xff]  ;;  %v450_v53 = vpack.c.bf16 %v442_v51, %v440_v49 }
  0xfd   : > { %v451_v54 = vpack.c.bf16 %v443_v52, %v441_v50 }
  0xfe   : > { %474 = vmatpush.bf16.msra.mxu0 %v450_v53 }
  0xff   : > { %487 = vmatpush.bf16.msra.mxu1 %v451_v54 }
 0x101   : > { %706 = vmatmul.msk.bf16.vlgmr.msra.gmra.mxu0 %vm456_vm12, %v239_v31 }
 0x102   : > { %707 = vmatmul.msk.bf16.vlgmr.msra.gmra.mxu1 %vm456_vm12, %v239_v31 }
 0x167   : > { %v587_v63 = vpop.xlane.xlu1 %586 }
 0x168   : > { %v595_v0 = vmul.f32 %v594_v61, %v587_v63 }
 0x16a   : > { %v597_v1 = vadd.f32 %v596_v62, %v595_v0 }
 0x16c   : > { %600 = vperm.xlu2 %783, %v597_v1  }
 0x17e   : > { %v476_v2 = vpop.f32.mrf.mxu0 }
 0x17f   : > { %v489_v3 = vpop.f32.mrf.mxu1  ;;  %v708_v6 = vmul.f32 -1.442695, %v476_v2 }
 0x180   : > { %v709_v7 = vmul.f32 -1.442695, %v489_v3 }
 0x181   : > { %787 = vpow2.f32 %v708_v6 }
 0x182   : > { %789 = vpow2.f32 %v709_v7 }
 0x186   : > { %v478_v4 = vpop.f32.mrf.mxu0 }
 0x187   : > { %v491_v5 = vpop.f32.mrf.mxu1  ;;  %v788_v8 = vpop.eup %787 }
 0x188   : > { %v790_v9 = vpop.eup %789  ;;  %v499_v10 = vadd.f32 1.0, %v788_v8 }
 0x189   : > { %v500_v11 = vadd.f32 1.0, %v790_v9 }
 0x18a   : > { %791 = vrcp.f32 %v499_v10  ;;  %vm506_vm14 = vweird.f32 %v499_v10  ;;  %v512_v20 = vand.u32 2147483648, %v499_v10  ;;  %v510_v24 = vand.u32 2147483647, %v499_v10 }
 0x18b   : > { %793 = vrcp.f32 %v500_v11  ;;  %vm521_vm0 = vweird.f32 %v500_v11  ;;  %v527_v21 = vand.u32 2147483648, %v500_v11  ;;  %v525_v26 = vand.u32 2147483647, %v500_v11 }
 0x18c   : > { %v513_v27 = vor.u32 1.1754944e-38, %v512_v20  ;;  %vm511_vm4 = vcmp.eq.f32.partialorder %v510_v24, 8.507059e+37 }
 0x18d   : > { %v528_v29 = vor.u32 1.1754944e-38, %v527_v21  ;;  %vm526_vm5 = vcmp.eq.f32.partialorder %v525_v26, 8.507059e+37 }
 0x190   : > { %v792_v12 = vpop.eup %791 }
 0x191   : > { %v794_v13 = vpop.eup %793  ;;  %v502_v14 = vmul.f32 %v792_v12, %v499_v10  ;;  %vm507_vm15 = vweird.f32 %v792_v12 }
 0x192   : > { %v517_v15 = vmul.f32 %v794_v13, %v500_v11  ;;  %vm522_vm1 = vweird.f32 %v794_v13  ;;  %vm508_vm2 = vmor %vm506_vm14, %vm507_vm15 }
 0x193   : > { %v503_v16 = vsub.f32 1.0, %v502_v14  ;;  %vm523_vm3 = vmor %vm521_vm0, %vm522_vm1 }
 0x194   : > { %v518_v17 = vsub.f32 1.0, %v517_v15 }
 0x195   : > { %v504_v18 = vmul.f32 %v792_v12, %v503_v16 }
 0x196   : > { %v519_v19 = vmul.f32 %v794_v13, %v518_v17 }
 0x197   : > { %v505_v22 = vadd.f32 %v792_v12, %v504_v18 }
 0x198   : > { %v520_v25 = vadd.f32 %v794_v13, %v519_v19 }
 0x199   : > { %v509_v30 = vsel %vm508_vm2, %v792_v12, %v505_v22 }
 0x19a   : > { %v524_v32 = vsel %vm523_vm3, %v794_v13, %v520_v25  ;;  %v514_v33 = vsel %vm511_vm4, %v513_v27, %v509_v30 }
 0x19b   : > { %v529_v34 = vsel %vm526_vm5, %v528_v29, %v524_v32  ;;  %v531_v36 = vmul.f32 %v514_v33, %v476_v2 }
 0x19c   : > { %v532_v37 = vmul.f32 %v529_v34, %v489_v3 }
 0x1c6   : > { %v601_v38 = vpop.permute.xlu2 %600 }
 0x1c7   : > { %v603_v28 = vadd.f32 %v601_v38, %v531_v36  ;;  %v604_v39 = vadd.f32 %v601_v38, %v532_v37 }
 0x1c9   : > { %605 = vst [vmem:[%s232_s25] sm:$0xff] %v603_v28 }
 0x1ca   : > { %606 = vst [vmem:[%s232_s25 + $0x8] sm:$0xff] %v604_v39 }
 0x1cb   : > { %852 = shalt.err (!%p849_p8)
}
 0x1cc   : > { %725 = dma.vmem_to_hbm [thread:$0]  (%p974_p5), %s622_s26, 256, %s624_s30, %s608_s22  }
 0x1cd PF: > { %p737_p9 = scmp.ge.s32.totalorder %s891_s21, 2  ;;  %s635_s13 = sand.u32 1, %s879_s18  }
 0x1ce   : > { %s636_s14 = scalar_lea.sflag [#allocation5], %s635_s13 }
 0x1cf   : > { %p732_p10 = pnand %p737_p9, %p978_p6 }
 0x1d1   : > { %p733_p11 = pneg %p732_p10 }
 0x1d3   : > { %874 = dma.done.wait (%p733_p11), %s636_s14, 256  }
 0x1d4   : > { %876 = vsyncadd (%p733_p11), %s636_s14, 4294967040  ;;  %p16_p12 = scmp.ge.s32.totalorder %s961_s24, 4   ;;  %s1073_s18 = smov %s883_s19 }
 0x1d5   : > { %s1074_s19 = smov %s887_s20  ;;  %s1075_s20 = smov %s972_s27 }
 0x1d6   : > { %s1076_s21 = smov %s961_s24  ;;  %18 = sbr.rel (!%p16_p12) target bundleno = 4 (0x4), region = 80 }
 0x1db   :  { %642 = vsyncpa [#allocation4], 1 }
 0x1dc   :  { %644 = vsyncpa [#allocation4 + $0x1], 1 }
 0x1dd   :  { %645 = vsyncpa [#allocation5], 1 }
 0x1de   :  { %647 = vsyncpa [#allocation5 + $0x1], 1 }

</bundles_post_ra>
